<compile_context>
chip_gen: v6e
topology: v6e:2x2x1
jax: 0.10.0
libtpu: 0.0.40
codegen_flags: <defaults>
</compile_context>

<pallas_src>
import functools

import jax
import jax.numpy as jnp
from jax.experimental import pallas as pl
from jax.experimental.pallas import tpu as pltpu

EPS = 1e-5
DIMS = [35, 64, 128, 256, 256, 128, 64, 1]   # layer_1 .. layer_6, layer_out
N_HIDDEN = 6
MAX_F = 256                                  # widest feature dim -> slab lane width
SLAB_ROWS = 2 * N_HIDDEN + 1                 # 6 gammas, 6 betas, 1 output bias


def _mlp_kernel(n_inv, x_ref, w1, w2, w3, w4, w5, w6, w_out, slab_ref, out_ref):
    """Entire forward pass, whole batch resident in VMEM (grid-less)."""
    w_refs = (w1, w2, w3, w4, w5, w6)
    h = x_ref[...]                                               # (N, 35) f32
    for l in range(N_HIDDEN):
        fo = DIMS[l + 1]
        # Linear, bias-free (BN cancels a pre-BN bias exactly). bf16 MXU, f32 acc.
        z = jnp.dot(h.astype(jnp.bfloat16), w_refs[l][...],
                    preferred_element_type=jnp.float32)          # (N, fo) f32
        # Training-mode BatchNorm folded to one scale/shift per feature,
        # single-pass sum / sum-of-squares statistics (f32 on the XLU).
        s1 = jnp.sum(z, axis=0, keepdims=True)                   # (1, fo)
        s2 = jnp.sum(z * z, axis=0, keepdims=True)               # (1, fo)
        mu = s1 * n_inv
        var = s2 * n_inv - mu * mu                               # biased variance
        gamma = slab_ref[l:l + 1, :fo]                           # (1, fo)
        beta = slab_ref[N_HIDDEN + l:N_HIDDEN + l + 1, :fo]      # (1, fo)
        scale = gamma * jax.lax.rsqrt(var + EPS)                 # EUP rsqrt
        shift = beta - mu * scale
        h = jnp.maximum(z * scale + shift, 0.0)                  # 2 VPU ops + ReLU
    b_out = slab_ref[2 * N_HIDDEN:2 * N_HIDDEN + 1, 0:1]         # (1, 1)
    out_ref[...] = jnp.dot(h.astype(jnp.bfloat16), w_out[...],
                           preferred_element_type=jnp.float32) + b_out


@jax.jit
def binary_classification_forward(x, weights_bf16, slab):
    n = x.shape[0]
    vmem = pl.BlockSpec(memory_space=pltpu.MemorySpace.VMEM)
    return pl.pallas_call(
        functools.partial(_mlp_kernel, 1.0 / n),
        out_shape=jax.ShapeDtypeStruct((n, 1), jnp.float32),
        in_specs=[vmem] * (1 + len(weights_bf16) + 1),
        out_specs=vmem,
    )(x, *weights_bf16, slab)


def init_params(key):
    """PyTorch-style init U(-1/sqrt(fan_in), 1/sqrt(fan_in)).

    Returns (weights_bf16, slab, ref_params):
      weights_bf16 : 7 bf16 (fan_in, fan_out) matrices shipped to the kernel
      slab         : (13, 256) f32 packed [gamma x6 ; beta x6 ; out-bias]
      ref_params   : unpacked f32 params (incl. the hidden biases the kernel
                     drops) for the full-precision reference.
    """
    ws, bs, gammas, betas = [], [], [], []
    for i in range(7):
        fan_in, fan_out = DIMS[i], DIMS[i + 1]
        key, kw, kb = jax.random.split(key, 3)
        bound = float(fan_in) ** -0.5
        ws.append(jax.random.uniform(kw, (fan_in, fan_out), jnp.float32, -bound, bound))
        bs.append(jax.random.uniform(kb, (1, fan_out), jnp.float32, -bound, bound))
        if i < N_HIDDEN:
            # PyTorch default is gamma=1, beta=0; perturb slightly so the folded
            # affine path is actually exercised by the correctness check.
            key, kg, kbe = jax.random.split(key, 3)
            gammas.append(1.0 + 0.1 * jax.random.normal(kg, (fan_out,), jnp.float32))
            betas.append(0.1 * jax.random.normal(kbe, (fan_out,), jnp.float32))

    slab = jnp.zeros((SLAB_ROWS, MAX_F), jnp.float32)
    for l in range(N_HIDDEN):
        fo = DIMS[l + 1]
        slab = slab.at[l, :fo].set(gammas[l])
        slab = slab.at[N_HIDDEN + l, :fo].set(betas[l])
    slab = slab.at[2 * N_HIDDEN, 0].set(bs[6][0, 0])

    weights_bf16 = tuple(w.astype(jnp.bfloat16) for w in ws)
    ref_params = {"w": ws, "b": bs,
                  "gamma": [g[None, :] for g in gammas],
                  "beta": [b[None, :] for b in betas]}
    return weights_bf16, slab, ref_params


def reference_matched(x, weights_bf16, slab, n):
    """Pure-JAX reference with the kernel's exact numerics."""
    n_inv = 1.0 / n
    h = x
    for l in range(N_HIDDEN):
        fo = DIMS[l + 1]
        z = jnp.dot(h.astype(jnp.bfloat16), weights_bf16[l],
                    preferred_element_type=jnp.float32)
        mu = jnp.sum(z, axis=0, keepdims=True) * n_inv
        var = jnp.sum(z * z, axis=0, keepdims=True) * n_inv - mu * mu
        scale = slab[l:l + 1, :fo] * jax.lax.rsqrt(var + EPS)
        shift = slab[N_HIDDEN + l:N_HIDDEN + l + 1, :fo] - mu * scale
        h = jnp.maximum(z * scale + shift, 0.0)
    return jnp.dot(h.astype(jnp.bfloat16), weights_bf16[6],
                   preferred_element_type=jnp.float32) + slab[2 * N_HIDDEN:2 * N_HIDDEN + 1, 0:1]


def reference_full_f32(x, p):
    """Original module semantics in f32: biases kept, unfused two-pass BatchNorm."""
    h = x
    for l in range(N_HIDDEN):
        h = h @ p["w"][l] + p["b"][l]
        mu = jnp.mean(h, axis=0, keepdims=True)
        var = jnp.mean((h - mu) ** 2, axis=0, keepdims=True)
        h = (h - mu) / jnp.sqrt(var + EPS) * p["gamma"][l] + p["beta"][l]
        h = jnp.maximum(h, 0.0)
    return h @ p["w"][6] + p["b"][6]


if __name__ == "__main__":
    key = jax.random.PRNGKey(0)
    kx, kp = jax.random.split(key)

    batch = 8  # small demo batch; real throughput wants 128 (v5e) / 256 (v6e/v7x) rows
    x = jax.random.normal(kx, (batch, DIMS[0]), jnp.float32)
    weights_bf16, slab, ref_params = init_params(kp)

    out = jax.block_until_ready(binary_classification_forward(x, weights_bf16, slab))
    assert out.shape == (batch, 1), out.shape

    # 1) exact-numerics check (bf16 dots, bias-free hidden layers, folded BN)
    ref_m = reference_matched(x, weights_bf16, slab, batch)
    err_m = float(jnp.max(jnp.abs(out - ref_m)))
    assert jnp.allclose(out, ref_m, atol=1e-3, rtol=1e-3), err_m

    # 2) semantic check vs the original f32 module math (biases + unfused BN);
    #    loose tolerance only covers bf16 matmul rounding.
    ref_f = reference_full_f32(x, ref_params)
    err_f = float(jnp.max(jnp.abs(out - ref_f)))
    assert err_f < 0.25, err_f

    print("KERNEL_OK")
</pallas_src>

<mosaic_0001>
module attributes {stable_mosaic.version = 11 : i64} {
  func.func @_mlp_kernel(%arg0: memref<8x35xf32, #tpu.memory_space<vmem>>, %arg1: memref<35x64xbf16, #tpu.memory_space<vmem>>, %arg2: memref<64x128xbf16, #tpu.memory_space<vmem>>, %arg3: memref<128x256xbf16, #tpu.memory_space<vmem>>, %arg4: memref<256x256xbf16, #tpu.memory_space<vmem>>, %arg5: memref<256x128xbf16, #tpu.memory_space<vmem>>, %arg6: memref<128x64xbf16, #tpu.memory_space<vmem>>, %arg7: memref<64x1xbf16, #tpu.memory_space<vmem>>, %arg8: memref<13x256xf32, #tpu.memory_space<vmem>>, %arg9: memref<8x1xf32, #tpu.memory_space<vmem>>) attributes {dimension_semantics = [], scalar_prefetch = 0 : i64, scratch_operands = 0 : i64, tpu.core_type = #tpu.core_type<tc>} {
    %c0 = arith.constant 0 : index
    %c0_0 = arith.constant 0 : index
    %0 = vector.load %arg0[%c0, %c0_0] : memref<8x35xf32, #tpu.memory_space<vmem>>, vector<8x35xf32>
    %1 = arith.truncf %0 : vector<8x35xf32> to vector<8x35xbf16>
    %c0_1 = arith.constant 0 : index
    %c0_2 = arith.constant 0 : index
    %2 = vector.load %arg1[%c0_1, %c0_2] : memref<35x64xbf16, #tpu.memory_space<vmem>>, vector<35x64xbf16>
    %cst = arith.constant dense<0.000000e+00> : vector<8x64xf32>
    %3 = tpu.matmul %1, %2, %cst {dimension_numbers = #tpu.dot_dimension_numbers<[1], [0], [0], [1], [0, 0, 1, 1], [], []>} : vector<8x35xbf16>, vector<35x64xbf16>, vector<8x64xf32> -> vector<8x64xf32>
    %cst_3 = arith.constant dense<0.000000e+00> : vector<64xf32>
    %4 = vector.multi_reduction <add>, %3, %cst_3 [0] : vector<8x64xf32> to vector<64xf32>
    %5 = vector.shape_cast %4 : vector<64xf32> to vector<1x64xf32>
    %6 = arith.mulf %3, %3 : vector<8x64xf32>
    %cst_4 = arith.constant dense<0.000000e+00> : vector<64xf32>
    %7 = vector.multi_reduction <add>, %6, %cst_4 [0] : vector<8x64xf32> to vector<64xf32>
    %8 = vector.shape_cast %7 : vector<64xf32> to vector<1x64xf32>
    %cst_5 = arith.constant 1.250000e-01 : f32
    %9 = vector.broadcast %cst_5 : f32 to vector<1x64xf32>
    %10 = arith.mulf %5, %9 : vector<1x64xf32>
    %cst_6 = arith.constant 1.250000e-01 : f32
    %11 = vector.broadcast %cst_6 : f32 to vector<1x64xf32>
    %12 = arith.mulf %8, %11 : vector<1x64xf32>
    %13 = arith.mulf %10, %10 : vector<1x64xf32>
    %14 = arith.subf %12, %13 : vector<1x64xf32>
    %c0_7 = arith.constant 0 : index
    %c0_8 = arith.constant 0 : index
    %15 = vector.load %arg8[%c0_7, %c0_8] : memref<13x256xf32, #tpu.memory_space<vmem>>, vector<1x64xf32>
    %c6 = arith.constant 6 : index
    %c0_9 = arith.constant 0 : index
    %16 = vector.load %arg8[%c6, %c0_9] : memref<13x256xf32, #tpu.memory_space<vmem>>, vector<1x64xf32>
    %cst_10 = arith.constant 9.99999974E-6 : f32
    %17 = vector.broadcast %cst_10 : f32 to vector<1x64xf32>
    %18 = arith.addf %14, %17 : vector<1x64xf32>
    %19 = math.rsqrt %18 : vector<1x64xf32>
    %20 = arith.mulf %15, %19 : vector<1x64xf32>
    %21 = arith.mulf %10, %20 : vector<1x64xf32>
    %22 = arith.subf %16, %21 : vector<1x64xf32>
    %23 = vector.broadcast %20 : vector<1x64xf32> to vector<8x64xf32>
    %24 = arith.mulf %3, %23 : vector<8x64xf32>
    %25 = vector.broadcast %22 : vector<1x64xf32> to vector<8x64xf32>
    %26 = arith.addf %24, %25 : vector<8x64xf32>
    %cst_11 = arith.constant 0.000000e+00 : f32
    %27 = vector.broadcast %cst_11 : f32 to vector<8x64xf32>
    %28 = arith.maximumf %26, %27 : vector<8x64xf32>
    %29 = arith.truncf %28 : vector<8x64xf32> to vector<8x64xbf16>
    %c0_12 = arith.constant 0 : index
    %c0_13 = arith.constant 0 : index
    %30 = vector.load %arg2[%c0_12, %c0_13] : memref<64x128xbf16, #tpu.memory_space<vmem>>, vector<64x128xbf16>
    %cst_14 = arith.constant dense<0.000000e+00> : vector<8x128xf32>
    %31 = tpu.matmul %29, %30, %cst_14 {dimension_numbers = #tpu.dot_dimension_numbers<[1], [0], [0], [1], [0, 0, 1, 1], [], []>} : vector<8x64xbf16>, vector<64x128xbf16>, vector<8x128xf32> -> vector<8x128xf32>
    %cst_15 = arith.constant dense<0.000000e+00> : vector<128xf32>
    %32 = vector.multi_reduction <add>, %31, %cst_15 [0] : vector<8x128xf32> to vector<128xf32>
    %33 = vector.shape_cast %32 : vector<128xf32> to vector<1x128xf32>
    %34 = arith.mulf %31, %31 : vector<8x128xf32>
    %cst_16 = arith.constant dense<0.000000e+00> : vector<128xf32>
    %35 = vector.multi_reduction <add>, %34, %cst_16 [0] : vector<8x128xf32> to vector<128xf32>
    %36 = vector.shape_cast %35 : vector<128xf32> to vector<1x128xf32>
    %cst_17 = arith.constant 1.250000e-01 : f32
    %37 = vector.broadcast %cst_17 : f32 to vector<1x128xf32>
    %38 = arith.mulf %33, %37 : vector<1x128xf32>
    %cst_18 = arith.constant 1.250000e-01 : f32
    %39 = vector.broadcast %cst_18 : f32 to vector<1x128xf32>
    %40 = arith.mulf %36, %39 : vector<1x128xf32>
    %41 = arith.mulf %38, %38 : vector<1x128xf32>
    %42 = arith.subf %40, %41 : vector<1x128xf32>
    %c1 = arith.constant 1 : index
    %c0_19 = arith.constant 0 : index
    %43 = vector.load %arg8[%c1, %c0_19] : memref<13x256xf32, #tpu.memory_space<vmem>>, vector<1x128xf32>
    %c7 = arith.constant 7 : index
    %c0_20 = arith.constant 0 : index
    %44 = vector.load %arg8[%c7, %c0_20] : memref<13x256xf32, #tpu.memory_space<vmem>>, vector<1x128xf32>
    %cst_21 = arith.constant 9.99999974E-6 : f32
    %45 = vector.broadcast %cst_21 : f32 to vector<1x128xf32>
    %46 = arith.addf %42, %45 : vector<1x128xf32>
    %47 = math.rsqrt %46 : vector<1x128xf32>
    %48 = arith.mulf %43, %47 : vector<1x128xf32>
    %49 = arith.mulf %38, %48 : vector<1x128xf32>
    %50 = arith.subf %44, %49 : vector<1x128xf32>
    %51 = vector.broadcast %48 : vector<1x128xf32> to vector<8x128xf32>
    %52 = arith.mulf %31, %51 : vector<8x128xf32>
    %53 = vector.broadcast %50 : vector<1x128xf32> to vector<8x128xf32>
    %54 = arith.addf %52, %53 : vector<8x128xf32>
    %cst_22 = arith.constant 0.000000e+00 : f32
    %55 = vector.broadcast %cst_22 : f32 to vector<8x128xf32>
    %56 = arith.maximumf %54, %55 : vector<8x128xf32>
    %57 = arith.truncf %56 : vector<8x128xf32> to vector<8x128xbf16>
    %c0_23 = arith.constant 0 : index
    %c0_24 = arith.constant 0 : index
    %58 = vector.load %arg3[%c0_23, %c0_24] : memref<128x256xbf16, #tpu.memory_space<vmem>>, vector<128x256xbf16>
    %cst_25 = arith.constant dense<0.000000e+00> : vector<8x256xf32>
    %59 = tpu.matmul %57, %58, %cst_25 {dimension_numbers = #tpu.dot_dimension_numbers<[1], [0], [0], [1], [0, 0, 1, 1], [], []>} : vector<8x128xbf16>, vector<128x256xbf16>, vector<8x256xf32> -> vector<8x256xf32>
    %cst_26 = arith.constant dense<0.000000e+00> : vector<256xf32>
    %60 = vector.multi_reduction <add>, %59, %cst_26 [0] : vector<8x256xf32> to vector<256xf32>
    %61 = vector.shape_cast %60 : vector<256xf32> to vector<1x256xf32>
    %62 = arith.mulf %59, %59 : vector<8x256xf32>
    %cst_27 = arith.constant dense<0.000000e+00> : vector<256xf32>
    %63 = vector.multi_reduction <add>, %62, %cst_27 [0] : vector<8x256xf32> to vector<256xf32>
    %64 = vector.shape_cast %63 : vector<256xf32> to vector<1x256xf32>
    %cst_28 = arith.constant 1.250000e-01 : f32
    %65 = vector.broadcast %cst_28 : f32 to vector<1x256xf32>
    %66 = arith.mulf %61, %65 : vector<1x256xf32>
    %cst_29 = arith.constant 1.250000e-01 : f32
    %67 = vector.broadcast %cst_29 : f32 to vector<1x256xf32>
    %68 = arith.mulf %64, %67 : vector<1x256xf32>
    %69 = arith.mulf %66, %66 : vector<1x256xf32>
    %70 = arith.subf %68, %69 : vector<1x256xf32>
    %c2 = arith.constant 2 : index
    %c0_30 = arith.constant 0 : index
    %71 = vector.load %arg8[%c2, %c0_30] : memref<13x256xf32, #tpu.memory_space<vmem>>, vector<1x256xf32>
    %c8 = arith.constant 8 : index
    %c0_31 = arith.constant 0 : index
    %72 = vector.load %arg8[%c8, %c0_31] : memref<13x256xf32, #tpu.memory_space<vmem>>, vector<1x256xf32>
    %cst_32 = arith.constant 9.99999974E-6 : f32
    %73 = vector.broadcast %cst_32 : f32 to vector<1x256xf32>
    %74 = arith.addf %70, %73 : vector<1x256xf32>
    %75 = math.rsqrt %74 : vector<1x256xf32>
    %76 = arith.mulf %71, %75 : vector<1x256xf32>
    %77 = arith.mulf %66, %76 : vector<1x256xf32>
    %78 = arith.subf %72, %77 : vector<1x256xf32>
    %79 = vector.broadcast %76 : vector<1x256xf32> to vector<8x256xf32>
    %80 = arith.mulf %59, %79 : vector<8x256xf32>
    %81 = vector.broadcast %78 : vector<1x256xf32> to vector<8x256xf32>
    %82 = arith.addf %80, %81 : vector<8x256xf32>
    %cst_33 = arith.constant 0.000000e+00 : f32
    %83 = vector.broadcast %cst_33 : f32 to vector<8x256xf32>
    %84 = arith.maximumf %82, %83 : vector<8x256xf32>
    %85 = arith.truncf %84 : vector<8x256xf32> to vector<8x256xbf16>
    %c0_34 = arith.constant 0 : index
    %c0_35 = arith.constant 0 : index
    %86 = vector.load %arg4[%c0_34, %c0_35] : memref<256x256xbf16, #tpu.memory_space<vmem>>, vector<256x256xbf16>
    %cst_36 = arith.constant dense<0.000000e+00> : vector<8x256xf32>
    %87 = tpu.matmul %85, %86, %cst_36 {dimension_numbers = #tpu.dot_dimension_numbers<[1], [0], [0], [1], [0, 0, 1, 1], [], []>} : vector<8x256xbf16>, vector<256x256xbf16>, vector<8x256xf32> -> vector<8x256xf32>
    %cst_37 = arith.constant dense<0.000000e+00> : vector<256xf32>
    %88 = vector.multi_reduction <add>, %87, %cst_37 [0] : vector<8x256xf32> to vector<256xf32>
    %89 = vector.shape_cast %88 : vector<256xf32> to vector<1x256xf32>
    %90 = arith.mulf %87, %87 : vector<8x256xf32>
    %cst_38 = arith.constant dense<0.000000e+00> : vector<256xf32>
    %91 = vector.multi_reduction <add>, %90, %cst_38 [0] : vector<8x256xf32> to vector<256xf32>
    %92 = vector.shape_cast %91 : vector<256xf32> to vector<1x256xf32>
    %cst_39 = arith.constant 1.250000e-01 : f32
    %93 = vector.broadcast %cst_39 : f32 to vector<1x256xf32>
    %94 = arith.mulf %89, %93 : vector<1x256xf32>
    %cst_40 = arith.constant 1.250000e-01 : f32
    %95 = vector.broadcast %cst_40 : f32 to vector<1x256xf32>
    %96 = arith.mulf %92, %95 : vector<1x256xf32>
    %97 = arith.mulf %94, %94 : vector<1x256xf32>
    %98 = arith.subf %96, %97 : vector<1x256xf32>
    %c3 = arith.constant 3 : index
    %c0_41 = arith.constant 0 : index
    %99 = vector.load %arg8[%c3, %c0_41] : memref<13x256xf32, #tpu.memory_space<vmem>>, vector<1x256xf32>
    %c9 = arith.constant 9 : index
    %c0_42 = arith.constant 0 : index
    %100 = vector.load %arg8[%c9, %c0_42] : memref<13x256xf32, #tpu.memory_space<vmem>>, vector<1x256xf32>
    %cst_43 = arith.constant 9.99999974E-6 : f32
    %101 = vector.broadcast %cst_43 : f32 to vector<1x256xf32>
    %102 = arith.addf %98, %101 : vector<1x256xf32>
    %103 = math.rsqrt %102 : vector<1x256xf32>
    %104 = arith.mulf %99, %103 : vector<1x256xf32>
    %105 = arith.mulf %94, %104 : vector<1x256xf32>
    %106 = arith.subf %100, %105 : vector<1x256xf32>
    %107 = vector.broadcast %104 : vector<1x256xf32> to vector<8x256xf32>
    %108 = arith.mulf %87, %107 : vector<8x256xf32>
    %109 = vector.broadcast %106 : vector<1x256xf32> to vector<8x256xf32>
    %110 = arith.addf %108, %109 : vector<8x256xf32>
    %cst_44 = arith.constant 0.000000e+00 : f32
    %111 = vector.broadcast %cst_44 : f32 to vector<8x256xf32>
    %112 = arith.maximumf %110, %111 : vector<8x256xf32>
    %113 = arith.truncf %112 : vector<8x256xf32> to vector<8x256xbf16>
    %c0_45 = arith.constant 0 : index
    %c0_46 = arith.constant 0 : index
    %114 = vector.load %arg5[%c0_45, %c0_46] : memref<256x128xbf16, #tpu.memory_space<vmem>>, vector<256x128xbf16>
    %cst_47 = arith.constant dense<0.000000e+00> : vector<8x128xf32>
    %115 = tpu.matmul %113, %114, %cst_47 {dimension_numbers = #tpu.dot_dimension_numbers<[1], [0], [0], [1], [0, 0, 1, 1], [], []>} : vector<8x256xbf16>, vector<256x128xbf16>, vector<8x128xf32> -> vector<8x128xf32>
    %cst_48 = arith.constant dense<0.000000e+00> : vector<128xf32>
    %116 = vector.multi_reduction <add>, %115, %cst_48 [0] : vector<8x128xf32> to vector<128xf32>
    %117 = vector.shape_cast %116 : vector<128xf32> to vector<1x128xf32>
    %118 = arith.mulf %115, %115 : vector<8x128xf32>
    %cst_49 = arith.constant dense<0.000000e+00> : vector<128xf32>
    %119 = vector.multi_reduction <add>, %118, %cst_49 [0] : vector<8x128xf32> to vector<128xf32>
    %120 = vector.shape_cast %119 : vector<128xf32> to vector<1x128xf32>
    %cst_50 = arith.constant 1.250000e-01 : f32
    %121 = vector.broadcast %cst_50 : f32 to vector<1x128xf32>
    %122 = arith.mulf %117, %121 : vector<1x128xf32>
    %cst_51 = arith.constant 1.250000e-01 : f32
    %123 = vector.broadcast %cst_51 : f32 to vector<1x128xf32>
    %124 = arith.mulf %120, %123 : vector<1x128xf32>
    %125 = arith.mulf %122, %122 : vector<1x128xf32>
    %126 = arith.subf %124, %125 : vector<1x128xf32>
    %c4 = arith.constant 4 : index
    %c0_52 = arith.constant 0 : index
    %127 = vector.load %arg8[%c4, %c0_52] : memref<13x256xf32, #tpu.memory_space<vmem>>, vector<1x128xf32>
    %c10 = arith.constant 10 : index
    %c0_53 = arith.constant 0 : index
    %128 = vector.load %arg8[%c10, %c0_53] : memref<13x256xf32, #tpu.memory_space<vmem>>, vector<1x128xf32>
    %cst_54 = arith.constant 9.99999974E-6 : f32
    %129 = vector.broadcast %cst_54 : f32 to vector<1x128xf32>
    %130 = arith.addf %126, %129 : vector<1x128xf32>
    %131 = math.rsqrt %130 : vector<1x128xf32>
    %132 = arith.mulf %127, %131 : vector<1x128xf32>
    %133 = arith.mulf %122, %132 : vector<1x128xf32>
    %134 = arith.subf %128, %133 : vector<1x128xf32>
    %135 = vector.broadcast %132 : vector<1x128xf32> to vector<8x128xf32>
    %136 = arith.mulf %115, %135 : vector<8x128xf32>
    %137 = vector.broadcast %134 : vector<1x128xf32> to vector<8x128xf32>
    %138 = arith.addf %136, %137 : vector<8x128xf32>
    %cst_55 = arith.constant 0.000000e+00 : f32
    %139 = vector.broadcast %cst_55 : f32 to vector<8x128xf32>
    %140 = arith.maximumf %138, %139 : vector<8x128xf32>
    %141 = arith.truncf %140 : vector<8x128xf32> to vector<8x128xbf16>
    %c0_56 = arith.constant 0 : index
    %c0_57 = arith.constant 0 : index
    %142 = vector.load %arg6[%c0_56, %c0_57] : memref<128x64xbf16, #tpu.memory_space<vmem>>, vector<128x64xbf16>
    %cst_58 = arith.constant dense<0.000000e+00> : vector<8x64xf32>
    %143 = tpu.matmul %141, %142, %cst_58 {dimension_numbers = #tpu.dot_dimension_numbers<[1], [0], [0], [1], [0, 0, 1, 1], [], []>} : vector<8x128xbf16>, vector<128x64xbf16>, vector<8x64xf32> -> vector<8x64xf32>
    %cst_59 = arith.constant dense<0.000000e+00> : vector<64xf32>
    %144 = vector.multi_reduction <add>, %143, %cst_59 [0] : vector<8x64xf32> to vector<64xf32>
    %145 = vector.shape_cast %144 : vector<64xf32> to vector<1x64xf32>
    %146 = arith.mulf %143, %143 : vector<8x64xf32>
    %cst_60 = arith.constant dense<0.000000e+00> : vector<64xf32>
    %147 = vector.multi_reduction <add>, %146, %cst_60 [0] : vector<8x64xf32> to vector<64xf32>
    %148 = vector.shape_cast %147 : vector<64xf32> to vector<1x64xf32>
    %cst_61 = arith.constant 1.250000e-01 : f32
    %149 = vector.broadcast %cst_61 : f32 to vector<1x64xf32>
    %150 = arith.mulf %145, %149 : vector<1x64xf32>
    %cst_62 = arith.constant 1.250000e-01 : f32
    %151 = vector.broadcast %cst_62 : f32 to vector<1x64xf32>
    %152 = arith.mulf %148, %151 : vector<1x64xf32>
    %153 = arith.mulf %150, %150 : vector<1x64xf32>
    %154 = arith.subf %152, %153 : vector<1x64xf32>
    %c5 = arith.constant 5 : index
    %c0_63 = arith.constant 0 : index
    %155 = vector.load %arg8[%c5, %c0_63] : memref<13x256xf32, #tpu.memory_space<vmem>>, vector<1x64xf32>
    %c11 = arith.constant 11 : index
    %c0_64 = arith.constant 0 : index
    %156 = vector.load %arg8[%c11, %c0_64] : memref<13x256xf32, #tpu.memory_space<vmem>>, vector<1x64xf32>
    %cst_65 = arith.constant 9.99999974E-6 : f32
    %157 = vector.broadcast %cst_65 : f32 to vector<1x64xf32>
    %158 = arith.addf %154, %157 : vector<1x64xf32>
    %159 = math.rsqrt %158 : vector<1x64xf32>
    %160 = arith.mulf %155, %159 : vector<1x64xf32>
    %161 = arith.mulf %150, %160 : vector<1x64xf32>
    %162 = arith.subf %156, %161 : vector<1x64xf32>
    %163 = vector.broadcast %160 : vector<1x64xf32> to vector<8x64xf32>
    %164 = arith.mulf %143, %163 : vector<8x64xf32>
    %165 = vector.broadcast %162 : vector<1x64xf32> to vector<8x64xf32>
    %166 = arith.addf %164, %165 : vector<8x64xf32>
    %cst_66 = arith.constant 0.000000e+00 : f32
    %167 = vector.broadcast %cst_66 : f32 to vector<8x64xf32>
    %168 = arith.maximumf %166, %167 : vector<8x64xf32>
    %c12 = arith.constant 12 : index
    %c0_67 = arith.constant 0 : index
    %169 = vector.load %arg8[%c12, %c0_67] : memref<13x256xf32, #tpu.memory_space<vmem>>, vector<1x1xf32>
    %170 = arith.truncf %168 : vector<8x64xf32> to vector<8x64xbf16>
    %c0_68 = arith.constant 0 : index
    %c0_69 = arith.constant 0 : index
    %171 = vector.load %arg7[%c0_68, %c0_69] : memref<64x1xbf16, #tpu.memory_space<vmem>>, vector<64x1xbf16>
    %cst_70 = arith.constant dense<0.000000e+00> : vector<8x1xf32>
    %172 = tpu.matmul %170, %171, %cst_70 {dimension_numbers = #tpu.dot_dimension_numbers<[1], [0], [0], [1], [0, 0, 1, 1], [], []>} : vector<8x64xbf16>, vector<64x1xbf16>, vector<8x1xf32> -> vector<8x1xf32>
    %173 = vector.broadcast %169 : vector<1x1xf32> to vector<8x1xf32>
    %174 = arith.addf %172, %173 : vector<8x1xf32>
    %c0_71 = arith.constant 0 : index
    %c0_72 = arith.constant 0 : index
    %175 = vector.load %arg9[%c0_71, %c0_72] : memref<8x1xf32, #tpu.memory_space<vmem>>, vector<8x1xf32>
    tpu.vector_store %arg9[%c0_71, %c0_72], %174 {strides = array<i32>} : memref<8x1xf32, #tpu.memory_space<vmem>>, vector<8x1xf32>,
    return
  }
}

</mosaic_0001>

<bundles_post_ra>
// kernel: binary_classification_forward.1
= control target key start
LH: loop header
LB: loop body
LE: loop exit
PB: predicated region body
PF: predicated region fallthrough
CT: control target
= control target key end

     0   :  { %14 = vsyncpa [#allocation3], 0  ;;  %s2033_s0 = inlined_call_operand.hbm [shape: f32[8,35], index: 0, kind: input, shape index: {}]   ;;  %s2034_s1 = inlined_call_operand.hbm [shape: bf16[35,64], index: 1, kind: input, shape index: {}]   ;;  %s2035_s2 = inlined_call_operand.hbm [shape: bf16[64,128], index: 2, kind: input, shape index: {}]   ;;  %s2036_s3 = inlined_call_operand.vmem [shape: bf16[128,256], index: 3, kind: input, shape index: {}]   ;;  %s2037_s4 = inlined_call_operand.hbm [shape: bf16[256,256], index: 4, kind: input, shape index: {}]   ;;  %s2038_s5 = inlined_call_operand.hbm [shape: bf16[256,128], index: 5, kind: input, shape index: {}]   ;;  %s2039_s6 = inlined_call_operand.vmem [shape: bf16[128,64], index: 6, kind: input, shape index: {}]   ;;  %s2040_s7 = inlined_call_operand.vmem [shape: bf16[64,1], index: 7, kind: input, shape index: {}]   ;;  %s2041_s8 = inlined_call_operand.hbm [shape: f32[13,256], index: 8, kind: input, shape index: {}]   ;;  %s2042_s9 = inlined_call_operand.vmem [shape: f32[8,1], index: 9, kind: output, shape index: {}]  }
   0x1   :  { %15 = vsyncpa [#allocation5], 0 }
   0x2   :  { %16 = vsyncpa [#allocation8], 0 }
   0x3   :  { %17 = vsyncpa [#allocation11], 0  ;;  %s1783_s30 = smov [#allocation4]  }
   0x4   :  { %s33_s10 = sshll.u32 %s1783_s30, 4  ;;  %s34_s10 = int_to_ptr.vmem [resolvable:$true] %s33_s10 }
   0x5   :  { %s1663_s11 = scalar_lea.vmem %s34_s10, 320  ;;  %p1668_p1 = scmp.lt.s32.totalorder %s34_s10, %s34_s10 }
   0x6   :  { %p1664_p0 = scmp.ne.s32.totalorder %s34_s10, %s1663_s11  ;;  %p1669_p2 = scmp.lt.s32.totalorder %s1663_s11, %s1663_s11 }
   0x8   :  { %p1670_p3 = por %p1669_p2, %p1668_p1 }
   0xa   :  { %p1671_p4 = pnand %p1670_p3, %p1664_p0 }
   0xc   :  { %1674 = shalt.err (!%p1671_p4)
}
   0xd   :  { %s1784_s12 = smov 64   ;;  %s1785_s13 = smov 4  }
   0xe   :  { %39 = dma.hbm_to_vmem [thread:$0]  %s2034_s1, 320, %s34_s10, [#allocation5], %s1784_s12, %s1784_s12, %s1785_s13  }
   0xf   :  { %s1786_s16 = smov [#allocation7]  }
  0x10   :  { %s59_s17 = sshll.u32 %s1786_s16, 4  ;;  %s60_s17 = int_to_ptr.vmem [resolvable:$true] %s59_s17 }
  0x11   :  { %s1683_s18 = scalar_lea.vmem %s60_s17, 4096  ;;  %p1688_p6 = scmp.lt.s32.totalorder %s60_s17, %s60_s17 }
  0x12   :  { %p1684_p5 = scmp.ne.s32.totalorder %s60_s17, %s1683_s18  ;;  %p1689_p7 = scmp.lt.s32.totalorder %s1683_s18, %s1683_s18 }
  0x14   :  { %p1690_p8 = por %p1689_p7, %p1688_p6 }
  0x16   :  { %p1691_p9 = pnand %p1690_p8, %p1684_p5 }
  0x18   :  { %1694 = shalt.err (!%p1691_p9)
}
  0x19   :  { %s1787_s19 = smov 128   ;;  %s1788_s20 = smov 8  }
  0x1a   :  { %65 = dma.hbm_to_vmem [thread:$0]  %s2037_s4, 4096, %s60_s17, [#allocation8], %s1787_s19, %s1787_s19, %s1788_s20  }
  0x1b   :  { %s1789_s23 = smov [#allocation2]   ;;  %s1790_s25 = smov [#allocation6]  }
  0x1c   :  { %s24_s24 = sshll.u32 %s1789_s23, 4  ;;  %s45_s1 = sshll.u32 %s1790_s25, 4  ;;  %s25_s24 = int_to_ptr.vmem [resolvable:$true] %s24_s24  ;;  %s46_s1 = int_to_ptr.vmem [resolvable:$true] %s45_s1 }
  0x1d   :  { %s1703_s26 = scalar_lea.vmem %s25_s24, 128  ;;  %p1708_p11 = scmp.lt.s32.totalorder %s25_s24, %s25_s24 }
  0x1e   :  { %p1704_p10 = scmp.ne.s32.totalorder %s25_s24, %s1703_s26  ;;  %p1709_p12 = scmp.lt.s32.totalorder %s1703_s26, %s1703_s26 }
  0x20   :  { %p1710_p13 = por %p1709_p12, %p1708_p11 }
  0x22   :  { %p1711_p0 = pnand %p1710_p13, %p1704_p10 }
  0x24   :  { %1714 = shalt.err (!%p1711_p0)
}
  0x25   :  { %27 = dma.hbm_to_vmem [thread:$0]  %s2033_s0, 128, %s25_s24, [#allocation3]  }
  0x26   :  { %s1723_s29 = scalar_lea.vmem %s46_s1, 512  ;;  %p1728_p2 = scmp.lt.s32.totalorder %s46_s1, %s46_s1 }
  0x27   :  { %p1724_p1 = scmp.ne.s32.totalorder %s46_s1, %s1723_s29  ;;  %p1729_p3 = scmp.lt.s32.totalorder %s1723_s29, %s1723_s29 }
  0x29   :  { %p1730_p4 = por %p1729_p3, %p1728_p2 }
  0x2b   :  { %p1731_p5 = pnand %p1730_p4, %p1724_p1 }
  0x2d   :  { %1734 = shalt.err (!%p1731_p5)
}
  0x2e   :  { %51 = dma.hbm_to_vmem [thread:$0]  %s2035_s2, 512, %s46_s1, [#allocation5], %s1784_s12, %s1784_s12, %s1785_s13  }
  0x2f   :  { %s1791_s10 = smov [#allocation9]   ;;  %s1792_s14 = smov [#allocation10]  }
  0x30   :  { %s71_s11 = sshll.u32 %s1791_s10, 4  ;;  %s87_s15 = sshll.u32 %s1792_s14, 4  ;;  %s72_s11 = int_to_ptr.vmem [resolvable:$true] %s71_s11  ;;  %s88_s15 = int_to_ptr.vmem [resolvable:$true] %s87_s15 }
  0x31   :  { %s1743_s0 = scalar_lea.vmem %s72_s11, 2048  ;;  %p1748_p7 = scmp.lt.s32.totalorder %s72_s11, %s72_s11 }
  0x32   :  { %p1744_p6 = scmp.ne.s32.totalorder %s72_s11, %s1743_s0  ;;  %p1749_p8 = scmp.lt.s32.totalorder %s1743_s0, %s1743_s0 }
  0x34   :  { %p1750_p9 = por %p1749_p8, %p1748_p7 }
  0x36   :  { %p1751_p10 = pnand %p1750_p9, %p1744_p6 }
  0x38   :  { %1754 = shalt.err (!%p1751_p10)
}
  0x39   :  { %77 = dma.hbm_to_vmem [thread:$0]  %s2038_s5, 2048, %s72_s11, [#allocation8], %s1784_s12, %s1784_s12, %s1785_s13  }
  0x3a   :  { %s1763_s2 = scalar_lea.vmem %s88_s15, 512  ;;  %p1768_p12 = scmp.lt.s32.totalorder %s88_s15, %s88_s15 }
  0x3b   :  { %p1764_p11 = scmp.ne.s32.totalorder %s88_s15, %s1763_s2  ;;  %p1769_p13 = scmp.lt.s32.totalorder %s1763_s2, %s1763_s2 }
  0x3d   :  { %p1770_p0 = por %p1769_p13, %p1768_p12 }
  0x3f   :  { %p1771_p1 = pnand %p1770_p0, %p1764_p11 }
  0x41   :  { %1774 = shalt.err (!%p1771_p1)
}
  0x42   :  { %s1793_s18 = smov 256   ;;  %s1794_s19 = smov 16  }
  0x43   :  { %93 = dma.hbm_to_vmem [thread:$0]  %s2041_s8, 512, %s88_s15, [#allocation11], %s1793_s18, %s1793_s18, %s1794_s19  }
  0x44   :  { %1775 = dma.done.wait [#allocation3], 128  }
  0x45   :  { %1776 = vsyncadd [#allocation3], 4294967168 }
  0x46   :  { %1777 = dma.done.wait [#allocation5], 832  }
  0x47   :  { %1778 = vsyncadd [#allocation5], 4294966464 }
  0x48   :  { %1779 = dma.done.wait [#allocation8], 6144  }
  0x49   :  { %1780 = vsyncadd [#allocation8], 4294961152 }
  0x4a   :  { %1781 = dma.done.wait [#allocation11], 512  }
  0x4b   :  { %1782 = vsyncadd [#allocation11], 4294966784  ;;  %vm139_vm0 = vcmask 1040384   ;;  %v1795_v0 = vmov 0.0   ;;  %vm1796_vm1 = vmmov 0   ;;  %vm140_vm2 = vcmask 1041408  }
  0x4c   :  { %1461 = vmatprep.subr.bf16.mxu0 %v1795_v0  ;;  %1471 = vmatprep.subr.bf16.mxu1 %v1795_v0  ;;  %v1797_v1 = vmov 65535   ;;  %v1532_v4 = vld [vmem:[#allocation4 + $0x10] ss:$0 sps:$4 sm:$0x33]   ;;  %v1533_v6 = vld [vmem:[#allocation4 + $0x8] sm:$0xff]   ;;  %v1534_v7 = vld [vmem:[#allocation4] sm:$0xff]  }
  0x4d   :  { %1467 = vmatprep.mubr.msk.bf16.mxu0 %vm1796_vm1, %v1795_v0  ;;  %1479 = vmatprep.mubr.msk.bf16.mxu1 %vm1796_vm1, %v1795_v0  ;;  %v141_v2 = vsel %vm139_vm0, 4294967295, %v1797_v1  ;;  %v113_v8 = vld [vmem:[#allocation2] sm:$0xff]  ;;  %vm135_vm3 = vcmask 285696   ;;  %v1535_v10 = vld [vmem:[#allocation6 + $0x18] sm:$0xff]   ;;  %v1536_v11 = vld [vmem:[#allocation6 + $0x10] sm:$0xff]   ;;  %vm186_vm4 = vcmask 523264  }
  0x4e   :  { %v142_v3 = vsel %vm140_vm2, %v141_v2, 0  ;;  %v114_v9 = vpack.c.bf16 %v113_v8, %v113_v8  ;;  %1472 = vmatpush3.bf16.msra.mxu1 %v1535_v10  ;;  %v1537_v12 = vld [vmem:[#allocation6 + $0x8] sm:$0xff]   ;;  %v1538_v13 = vld [vmem:[#allocation6] sm:$0xff]   ;;  %v1539_v49 = vld [vmem:[%s2036_s3 + $0x70] ss:$8 sps:$4 sm:$0xff]   ;;  %v1798_v1 = vmov 0  }
  0x4f   :  { %v144_v5 = vand.u32 %v1532_v4, %v142_v3  ;;  %1473 = vmatprep.subr.bf16.mxu1 %v1795_v0  ;;  %v206_v38 = vld [vmem:[#allocation10] ss:$0 sm:$0xff]  ;;  %v207_v41 = vld [vmem:[#allocation10 + $0x6] ss:$0 sm:$0xff]  ;;  %v1544_v50 = vld [vmem:[%s2036_s3 + $0x64] ss:$8 sps:$4 sm:$0xff]  }
  0x50   :  { %v1541_v48 = vld [vmem:[%s2036_s3 + $0x74] ss:$8 sps:$4 sm:$0xff]   ;;  %v1542_v51 = vld [vmem:[%s2036_s3 + $0x60] ss:$8 sps:$4 sm:$0xff]   ;;  %v1545_v53 = vld [vmem:[%s2036_s3 + $0x50] ss:$8 sps:$4 sm:$0xff]  }
  0x51   :  { %1462 = vmatpush3.bf16.msra.mxu0 %v144_v5  ;;  %v1547_v52 = vld [vmem:[%s2036_s3 + $0x54] ss:$8 sps:$4 sm:$0xff]   ;;  %v1550_v54 = vld [vmem:[%s2036_s3 + $0x44] ss:$8 sps:$4 sm:$0xff]   ;;  %v1548_v55 = vld [vmem:[%s2036_s3 + $0x40] ss:$8 sps:$4 sm:$0xff]  }
  0x52   :  { %1463 = vmatprep.subr.bf16.mxu0 %v1795_v0  ;;  %1474 = vmatpush3.bf16.msra.mxu1 %v1536_v11  ;;  %v1553_v56 = vld [vmem:[%s2036_s3 + $0x34] ss:$8 sps:$4 sm:$0xff]   ;;  %v1551_v57 = vld [vmem:[%s2036_s3 + $0x30] ss:$8 sps:$4 sm:$0xff]   ;;  %v1556_v58 = vld [vmem:[%s2036_s3 + $0x24] ss:$8 sps:$4 sm:$0xff]  }
  0x53   :  { %1475 = vmatprep.subr.bf16.mxu1 %v1795_v0  ;;  %v1554_v59 = vld [vmem:[%s2036_s3 + $0x20] ss:$8 sps:$4 sm:$0xff]   ;;  %v1559_v60 = vld [vmem:[%s2036_s3 + $0x14] ss:$8 sps:$4 sm:$0xff]   ;;  %v1557_v61 = vld [vmem:[%s2036_s3 + $0x10] ss:$8 sps:$4 sm:$0xff]  }
  0x54   :  { %v1560_v62 = vld [vmem:[%s2036_s3] ss:$8 sps:$4 sm:$0xff]   ;;  %v1562_v63 = vld [vmem:[%s2036_s3 + $0x4] ss:$8 sps:$4 sm:$0xff]   ;;  %vm1320_vm5 = vcmask 7168  }
  0x55   :  { %1464 = vmatpush3.bf16.msra.mxu0 %v1533_v6 }
  0x56   :  { %1465 = vmatprep.subr.bf16.mxu0 %v1795_v0  ;;  %1476 = vmatpush3.bf16.msra.mxu1 %v1537_v12 }
  0x57   :  { %1477 = vmatprep.subr.bf16.mxu1 %v1795_v0 }
  0x59   :  { %1466 = vmatpush3.bf16.msra.mxu0 %v1534_v7 }
  0x5a   :  { %1478 = vmatpush3.bf16.msra.mxu1 %v1538_v13  ;;  %416 = vmatprep.subr.bf16.mxu0 %v1541_v48  ;;  %v1586_v48 = vld [vmem:[#allocation7 + $0x4] ss:$8 sps:$4 sm:$0xff]  }
  0x5c   :  { %1468 = vmatmul.mubr.msk.bf16.vlgmr.msra.gmra.mxu0 %vm135_vm3, %v114_v9 }
  0x5d   :  { %417 = vmatpush1.bf16.msra.mxu0 %v1539_v49  ;;  %448 = vmatprep.mubr.bf16.mxu0 %v1798_v1  ;;  %v1584_v49 = vld [vmem:[#allocation7] ss:$8 sps:$4 sm:$0xff]   ;;  %v1610_v1 = vld [vmem:[#allocation7 + $0x84] ss:$8 sps:$4 sm:$0xff]  }
  0x5e   :  { %418 = vmatprep.subr.bf16.mxu0 %v1544_v50  ;;  %v1589_v50 = vld [vmem:[#allocation7 + $0xf4] ss:$8 sps:$4 sm:$0xff]  }
  0x61   :  { %419 = vmatpush1.bf16.msra.mxu0 %v1542_v51  ;;  %v1587_v51 = vld [vmem:[#allocation7 + $0xf0] ss:$8 sps:$4 sm:$0xff]  }
  0x62   :  { %420 = vmatprep.subr.bf16.mxu0 %v1547_v52  ;;  %v1592_v52 = vld [vmem:[#allocation7 + $0xe4] ss:$8 sps:$4 sm:$0xff]  }
  0x65   :  { %421 = vmatpush1.bf16.msra.mxu0 %v1545_v53  ;;  %v1590_v53 = vld [vmem:[#allocation7 + $0xe0] ss:$8 sps:$4 sm:$0xff]  }
  0x66   :  { %422 = vmatprep.subr.bf16.mxu0 %v1550_v54  ;;  %v1595_v54 = vld [vmem:[#allocation7 + $0xd4] ss:$8 sps:$4 sm:$0xff]  }
  0x69   :  { %423 = vmatpush1.bf16.msra.mxu0 %v1548_v55  ;;  %v1593_v55 = vld [vmem:[#allocation7 + $0xd0] ss:$8 sps:$4 sm:$0xff]  }
  0x6a   :  { %424 = vmatprep.subr.bf16.mxu0 %v1553_v56  ;;  %v1598_v56 = vld [vmem:[#allocation7 + $0xc4] ss:$8 sps:$4 sm:$0xff]  }
  0x6d   :  { %425 = vmatpush1.bf16.msra.mxu0 %v1551_v57  ;;  %v1596_v57 = vld [vmem:[#allocation7 + $0xc0] ss:$8 sps:$4 sm:$0xff]  }
  0x6e   :  { %426 = vmatprep.subr.bf16.mxu0 %v1556_v58  ;;  %v1601_v58 = vld [vmem:[#allocation7 + $0xb4] ss:$8 sps:$4 sm:$0xff]  }
  0x71   :  { %427 = vmatpush1.bf16.msra.mxu0 %v1554_v59  ;;  %v1599_v59 = vld [vmem:[#allocation7 + $0xb0] ss:$8 sps:$4 sm:$0xff]  }
  0x72   :  { %428 = vmatprep.subr.bf16.mxu0 %v1559_v60  ;;  %v1604_v60 = vld [vmem:[#allocation7 + $0xa4] ss:$8 sps:$4 sm:$0xff]  }
  0x75   :  { %429 = vmatpush1.bf16.msra.mxu0 %v1557_v61  ;;  %v1602_v61 = vld [vmem:[#allocation7 + $0xa0] ss:$8 sps:$4 sm:$0xff]  }
  0x76   :  { %430 = vmatprep.subr.bf16.mxu0 %v1562_v63  ;;  %v1605_v63 = vld [vmem:[#allocation7 + $0x90] ss:$8 sps:$4 sm:$0xff]  }
  0x79   :  { %431 = vmatpush1.bf16.msra.mxu0 %v1560_v62  ;;  %v1607_v62 = vld [vmem:[#allocation7 + $0x94] ss:$8 sps:$4 sm:$0xff]  }
 0x11c   :  { %v180_v14 = vpop.f32.mrf.mxu0 }
 0x11d   :  { %v187_v15 = vsel %vm186_vm4, %v180_v14, 0.0  ;;  %v194_v16 = vmul.f32 %v180_v14, %v180_v14 }
 0x11e   :  { %v188_v17 = vrot.slane %v187_v15, 4  ;;  %v1469_v18 = vpop.f32.mrf.mxu0 }
 0x11f   :  { %v195_v19 = vsel %vm186_vm4, %v194_v16, 0.0 }
 0x120   :  { %v189_v20 = vadd.f32 %v188_v17, %v187_v15  ;;  %v196_v21 = vrot.slane %v195_v19, 4  ;;  %v183_v22 = vpop.f32.mrf.mxu0 }
 0x122   :  { %v190_v23 = vrot.slane %v189_v20, 2  ;;  %v197_v24 = vadd.f32 %v196_v21, %v195_v19  ;;  %v1470_v25 = vpop.f32.mrf.mxu0 }
 0x124   :  { %v191_v26 = vadd.f32 %v190_v23, %v189_v20  ;;  %v198_v27 = vrot.slane %v197_v24, 2 }
 0x126   :  { %v192_v28 = vrot.slane %v191_v26, 1  ;;  %v199_v29 = vadd.f32 %v198_v27, %v197_v24  ;;  %v309_v24 = vld [vmem:[#allocation10 + $0x1] ss:$0 sm:$0xff]  ;;  %v310_v27 = vld [vmem:[#allocation10 + $0x7] ss:$0 sm:$0xff] }
 0x128   :  { %v193_v30 = vadd.f32 %v192_v28, %v191_v26  ;;  %v200_v31 = vrot.slane %v199_v29, 1 }
 0x12a   :  { %v201_v32 = vadd.f32 %v200_v31, %v199_v29  ;;  %v202_v33 = vmul.f32 0.125, %v193_v30 }
 0x12c   :  { %v203_v34 = vmul.f32 0.125, %v201_v32  ;;  %v204_v35 = vmul.f32 %v202_v33, %v202_v33 }
 0x12e   :  { %v205_v36 = vsub.f32 %v203_v34, %v204_v35  ;;  %v1565_v34 = vld [vmem:[#allocation7 + $0x74] ss:$8 sps:$4 sm:$0xff]   ;;  %v1563_v35 = vld [vmem:[#allocation7 + $0x70] ss:$8 sps:$4 sm:$0xff]  }
 0x12f   :  { %761 = vmatprep.subr.bf16.mxu1 %v1565_v34 }
 0x130   :  { %v208_v37 = vadd.f32 1e-05, %v205_v36  ;;  %v1568_v36 = vld [vmem:[#allocation7 + $0x64] ss:$8 sps:$4 sm:$0xff]  }
 0x132   :  { %1639 = vrsqrt.f32 %v208_v37  ;;  %v1566_v37 = vld [vmem:[#allocation7 + $0x60] ss:$8 sps:$4 sm:$0xff]  }
 0x13f   :  { %v1640_v39 = vpop.eup %1639 }
 0x140   :  { %v210_v40 = vmul.f32 %v1640_v39, %v206_v38  ;;  %v1571_v38 = vld [vmem:[#allocation7 + $0x54] ss:$8 sps:$4 sm:$0xff]   ;;  %v1569_v39 = vld [vmem:[#allocation7 + $0x50] ss:$8 sps:$4 sm:$0xff]  }
 0x142   :  { %v211_v42 = vmul.f32 %v210_v40, %v202_v33  ;;  %v213_v44 = vmul.f32 %v210_v40, %v180_v14  ;;  %v1574_v40 = vld [vmem:[#allocation7 + $0x44] ss:$8 sps:$4 sm:$0xff]  }
 0x144   :  { %v212_v43 = vsub.f32 %v207_v41, %v211_v42  ;;  %v1572_v41 = vld [vmem:[#allocation7 + $0x40] ss:$8 sps:$4 sm:$0xff]   ;;  %v1577_v42 = vld [vmem:[#allocation7 + $0x34] ss:$8 sps:$4 sm:$0xff]  }
 0x146   :  { %v214_v45 = vadd.f32 %v213_v44, %v212_v43  ;;  %v1575_v43 = vld [vmem:[#allocation7 + $0x30] ss:$8 sps:$4 sm:$0xff]   ;;  %v1580_v44 = vld [vmem:[#allocation7 + $0x24] ss:$8 sps:$4 sm:$0xff]  }
 0x148   :  { %v215_v46 = vmax.f32 %v214_v45, 0.0  ;;  %v1578_v45 = vld [vmem:[#allocation7 + $0x20] ss:$8 sps:$4 sm:$0xff]  }
 0x14a   :  { %v216_v47 = vpack.c.bf16 %v215_v46, %v215_v46  ;;  %v1583_v46 = vld [vmem:[#allocation7 + $0x14] ss:$8 sps:$4 sm:$0xff]  }
 0x14c   :  { %1480 = vmatmul.mubr.msk.bf16.vlgmr.msra.gmra.mxu1 %vm186_vm4, %v216_v47  ;;  %v1581_v47 = vld [vmem:[#allocation7 + $0x10] ss:$8 sps:$4 sm:$0xff]  }
 0x14d   :  { %762 = vmatpush1.bf16.msra.mxu1 %v1563_v35 }
 0x14e   :  { %763 = vmatprep.subr.bf16.mxu1 %v1568_v36 }
 0x151   :  { %764 = vmatpush1.bf16.msra.mxu1 %v1566_v37 }
 0x152   :  { %765 = vmatprep.subr.bf16.mxu1 %v1571_v38 }
 0x155   :  { %766 = vmatpush1.bf16.msra.mxu1 %v1569_v39 }
 0x156   :  { %767 = vmatprep.subr.bf16.mxu1 %v1574_v40 }
 0x159   :  { %768 = vmatpush1.bf16.msra.mxu1 %v1572_v41 }
 0x15a   :  { %769 = vmatprep.subr.bf16.mxu1 %v1577_v42 }
 0x15d   :  { %770 = vmatpush1.bf16.msra.mxu1 %v1575_v43  ;;  %v1799_v43 = vmov 1966171168  }
 0x15e   :  { %771 = vmatprep.subr.bf16.mxu1 %v1580_v44  ;;  %v503_v44 = vunpack.c.l.s4 %v1799_v43 }
 0x161   :  { %772 = vmatpush1.bf16.msra.mxu1 %v1578_v45  ;;  %v505_v45 = vlaneseq }
 0x162   :  { %773 = vmatprep.subr.bf16.mxu1 %v1583_v46  ;;  %v504_v46 = vunpack.c.0.s8 %v503_v44 }
 0x165   :  { %774 = vmatpush1.bf16.msra.mxu1 %v1581_v47  ;;  %v506_v47 = vshrl.u32 %v505_v45, 7 }
 0x166   :  { %775 = vmatprep.subr.bf16.mxu1 %v1586_v48 }
 0x169   :  { %776 = vmatpush1.bf16.msra.mxu1 %v1584_v49  ;;  %v1952_v49 = vsub.s32 %v504_v46, %v506_v47 }
 0x16a   :  { %777 = vmatprep.subr.bf16.mxu1 %v1589_v50 }
 0x16d   :  { %778 = vmatpush2.bf16.msra.mxu1 %v1587_v51 }
 0x16e   :  { %779 = vmatprep.subr.bf16.mxu1 %v1592_v52 }
 0x171   :  { %780 = vmatpush2.bf16.msra.mxu1 %v1590_v53  ;;  %v492_v53 = vld [vmem:[#allocation10 + $0x2] ss:$8 sm:$0x3] }
 0x172   :  { %781 = vmatprep.subr.bf16.mxu1 %v1595_v54 }
 0x175   :  { %782 = vmatpush2.bf16.msra.mxu1 %v1593_v55  ;;  %v1956_v55 = vsub.s32 0, %v506_v47 }
 0x176   :  { %783 = vmatprep.subr.bf16.mxu1 %v1598_v56  ;;  %v1958_v56 = vsub.s32 1, %v506_v47 }
 0x179   :  { %784 = vmatpush2.bf16.msra.mxu1 %v1596_v57 }
 0x17a   :  { %785 = vmatprep.subr.bf16.mxu1 %v1601_v58 }
 0x17d   :  { %786 = vmatpush2.bf16.msra.mxu1 %v1599_v59 }
 0x17e   :  { %787 = vmatprep.subr.bf16.mxu1 %v1604_v60 }
 0x181   :  { %788 = vmatpush2.bf16.msra.mxu1 %v1602_v61 }
 0x182   :  { %789 = vmatprep.subr.bf16.mxu1 %v1607_v62 }
 0x185   :  { %790 = vmatpush2.bf16.msra.mxu1 %v1605_v63 }
 0x186   :  { %791 = vmatprep.subr.bf16.mxu1 %v1610_v1  ;;  %v494_v1 = vld [vmem:[#allocation10 + $0x10] ss:$8 sm:$0x3] }
 0x20c   :  { %v286_v2 = vpop.f32.mrf.mxu1 }
 0x20d   :  { %v292_v3 = vrot.slane %v286_v2, 4  ;;  %v298_v4 = vmul.f32 %v286_v2, %v286_v2 }
 0x20e   :  { %v1481_v5 = vpop.f32.mrf.mxu1 }
 0x20f   :  { %v293_v6 = vadd.f32 %v292_v3, %v286_v2  ;;  %v299_v7 = vrot.slane %v298_v4, 4 }
 0x210   :  { %v289_v8 = vpop.f32.mrf.mxu1 }
 0x211   :  { %v294_v9 = vrot.slane %v293_v6, 2  ;;  %v300_v10 = vadd.f32 %v299_v7, %v298_v4 }
 0x212   :  { %v1482_v11 = vpop.f32.mrf.mxu1 }
 0x213   :  { %v295_v12 = vadd.f32 %v294_v9, %v293_v6  ;;  %v301_v13 = vrot.slane %v300_v10, 2 }
 0x215   :  { %v296_v14 = vrot.slane %v295_v12, 1  ;;  %v302_v15 = vadd.f32 %v301_v13, %v300_v10 }
 0x217   :  { %v297_v16 = vadd.f32 %v296_v14, %v295_v12  ;;  %v303_v17 = vrot.slane %v302_v15, 1 }
 0x219   :  { %v304_v18 = vadd.f32 %v303_v17, %v302_v15  ;;  %v305_v19 = vmul.f32 0.125, %v297_v16 }
 0x21b   :  { %v306_v20 = vmul.f32 0.125, %v304_v18  ;;  %v307_v21 = vmul.f32 %v305_v19, %v305_v19 }
 0x21d   :  { %v308_v22 = vsub.f32 %v306_v20, %v307_v21 }
 0x21f   :  { %v311_v23 = vadd.f32 1e-05, %v308_v22 }
 0x221   :  { %1641 = vrsqrt.f32 %v311_v23 }
 0x22e   :  { %v1642_v25 = vpop.eup %1641 }
 0x22f   :  { %v313_v26 = vmul.f32 %v1642_v25, %v309_v24 }
 0x231   :  { %v314_v28 = vmul.f32 %v313_v26, %v305_v19  ;;  %v316_v30 = vmul.f32 %v313_v26, %v286_v2  ;;  %v1608_v2 = vld [vmem:[#allocation7 + $0x80] ss:$8 sps:$4 sm:$0xff]  }
 0x232   :  { %792 = vmatpush2.bf16.msra.mxu1 %v1608_v2 }
 0x233   :  { %v315_v29 = vsub.f32 %v310_v27, %v314_v28  ;;  %1503 = vmatprep.subr.bf16.mxu1 %v1795_v0 }
 0x235   :  { %v317_v31 = vadd.f32 %v316_v30, %v315_v29 }
 0x237   :  { %v318_v32 = vmax.f32 %v317_v31, 0.0 }
 0x239   :  { %v319_v33 = vpack.c.bf16 %v318_v32, %v318_v32 }
 0x23b   :  { %449 = vmatmul.mubr.bf16.vlgmr.msra.gmra.mxu0 %v319_v33 }
 0x2fb   :  { %v1940_v3 = vpop.f32.mrf.mxu0 }
 0x2fc   :  { %v457_v4 = vrot.slane %v1940_v3, 4  ;;  %v469_v5 = vmul.f32 %v1940_v3, %v1940_v3 }
 0x2fd   :  { %v1945_v6 = vpop.f32.mrf.mxu0 }
 0x2fe   :  { %v458_v7 = vadd.f32 %v457_v4, %v1940_v3  ;;  %v471_v8 = vrot.slane %v469_v5, 4  ;;  %v463_v9 = vrot.slane %v1945_v6, 4  ;;  %v470_v10 = vmul.f32 %v1945_v6, %v1945_v6 }
 0x2ff   :  { %v454_v11 = vpop.f32.mrf.mxu0 }
 0x300   :  { %v459_v12 = vrot.slane %v458_v7, 2  ;;  %v472_v13 = vadd.f32 %v471_v8, %v469_v5  ;;  %v464_v14 = vadd.f32 %v463_v9, %v1945_v6  ;;  %v477_v15 = vrot.slane %v470_v10, 4 }
 0x301   :  { %v455_v16 = vpop.f32.mrf.mxu0 }
 0x302   :  { %v460_v17 = vadd.f32 %v459_v12, %v458_v7  ;;  %v473_v18 = vrot.slane %v472_v13, 2  ;;  %v465_v19 = vrot.slane %v464_v14, 2  ;;  %v478_v20 = vadd.f32 %v477_v15, %v470_v10  ;;  %v1611_v16 = vld [vmem:[#allocation9 + $0x78] sm:$0xff]  }
 0x303   :  { %1425 = vmatprep.subr.bf16.mxu0 %v1611_v16  ;;  %v837_v16 = vld [vmem:[#allocation10 + $0x3] ss:$8 sm:$0x3] }
 0x304   :  { %v461_v21 = vrot.slane %v460_v17, 1  ;;  %v474_v22 = vadd.f32 %v473_v18, %v472_v13  ;;  %v466_v23 = vadd.f32 %v465_v19, %v464_v14  ;;  %v479_v24 = vrot.slane %v478_v20, 2  ;;  %v1614_v18 = vld [vmem:[#allocation9 + $0x30] sm:$0xff]   ;;  %v1616_v19 = vld [vmem:[#allocation9 + $0x28] sm:$0xff]  }
 0x306   :  { %v462_v25 = vadd.f32 %v461_v21, %v460_v17  ;;  %v475_v26 = vrot.slane %v474_v22, 1  ;;  %v467_v27 = vrot.slane %v466_v23, 1  ;;  %v480_v28 = vadd.f32 %v479_v24, %v478_v20  ;;  %v1612_v17 = vld [vmem:[#allocation9 + $0x38] sm:$0xff]   ;;  %v1617_v20 = vld [vmem:[#allocation9 + $0x60] sm:$0xff]   ;;  %v1621_v24 = vld [vmem:[#allocation9 + $0x50] sm:$0xff]  }
 0x307   :  { %1426 = vmatpush3.bf16.msra.mxu0 %v1612_v17  ;;  %v1618_v21 = vld [vmem:[#allocation9 + $0x20] sm:$0xff]  }
 0x308   :  { %v476_v29 = vadd.f32 %v475_v26, %v474_v22  ;;  %v483_v30 = vmul.f32 0.125, %v462_v25  ;;  %v468_v31 = vadd.f32 %v467_v27, %v466_v23  ;;  %v481_v32 = vrot.slane %v480_v28, 1  ;;  %v1619_v22 = vld [vmem:[#allocation9 + $0x58] sm:$0xff]   ;;  %v1622_v25 = vld [vmem:[#allocation9 + $0x10] sm:$0xff]   ;;  %v1623_v26 = vld [vmem:[#allocation9 + $0x48] sm:$0xff]  }
 0x309   :  { %v1620_v23 = vld [vmem:[#allocation9 + $0x18] sm:$0xff]   ;;  %v1624_v27 = vld [vmem:[#allocation9 + $0x8] sm:$0xff]  }
 0x30a   :  { %v485_v33 = vmul.f32 0.125, %v476_v29  ;;  %v487_v34 = vmul.f32 %v483_v30, %v483_v30  ;;  %v482_v35 = vadd.f32 %v481_v32, %v480_v28  ;;  %v484_v36 = vmul.f32 0.125, %v468_v31  ;;  %v1625_v28 = vld [vmem:[#allocation9 + $0x40] sm:$0xff]  }
 0x30b   :  { %v1626_v29 = vld [vmem:[#allocation9] sm:$0xff]  }
 0x30c   :  { %v489_v37 = vsub.f32 %v485_v33, %v487_v34  ;;  %v486_v38 = vmul.f32 0.125, %v482_v35  ;;  %v488_v39 = vmul.f32 %v484_v36, %v484_v36 }
 0x30e   :  { %v495_v40 = vadd.f32 1e-05, %v489_v37  ;;  %v490_v41 = vsub.f32 %v486_v38, %v488_v39 }
 0x310   :  { %v496_v42 = vadd.f32 1e-05, %v490_v41  ;;  %1643 = vrsqrt.f32 %v495_v40 }
 0x312   :  { %1645 = vrsqrt.f32 %v496_v42 }
 0x31d   :  { %v1644_v48 = vpop.eup %1643 }
 0x31f   :  { %v1646_v50 = vpop.eup %1645 }
 0x320   :  { %v501_v51 = vcombine.low %v1644_v48, %v1646_v50 }
 0x322   :  { %v508_v52 = vrot.slane %v501_v51, %v1952_v49 }
 0x324   :  { %v515_v54 = vrot.slane %v508_v52, %v1952_v49 }
 0x326   :  { %v517_v57 = vmul.f32 %v515_v54, %v492_v53 }
 0x328   :  { %v522_v58 = vrot.slane %v517_v57, %v1956_v55  ;;  %v526_v59 = vrot.slane %v517_v57, %v1958_v56 }
 0x32a   :  { %v529_v60 = vmul.f32 %v522_v58, %v483_v30  ;;  %v530_v61 = vmul.f32 %v526_v59, %v484_v36  ;;  %v551_v5 = vmul.f32 %v526_v59, %v1945_v6  ;;  %v550_v8 = vmul.f32 %v522_v58, %v1940_v3  ;;  %v1613_v6 = vld [vmem:[#allocation9 + $0x70] sm:$0xff]   ;;  %v1615_v3 = vld [vmem:[#allocation9 + $0x68] sm:$0xff]  }
 0x32b   :  { %1427 = vmatprep.subr.bf16.mxu0 %v1613_v6 }
 0x32c   :  { %v533_v62 = vcombine.low %v529_v60, %v530_v61  ;;  %1428 = vmatpush3.bf16.msra.mxu0 %v1614_v18 }
 0x32d   :  { %1429 = vmatprep.subr.bf16.mxu0 %v1615_v3 }
 0x32e   :  { %v540_v63 = vrot.slane %v533_v62, %v1952_v49 }
 0x330   :  { %v547_v2 = vrot.slane %v540_v63, %v1952_v49  ;;  %1430 = vmatpush3.bf16.msra.mxu0 %v1616_v19 }
 0x331   :  { %1431 = vmatprep.subr.bf16.mxu0 %v1617_v20 }
 0x332   :  { %v549_v4 = vsub.f32 %v494_v1, %v547_v2 }
 0x334   :  { %v560_v7 = vrot.slane %v549_v4, %v1958_v56  ;;  %v556_v9 = vrot.slane %v549_v4, %v1956_v55  ;;  %1432 = vmatpush3.bf16.msra.mxu0 %v1618_v21 }
 0x335   :  { %1433 = vmatprep.subr.bf16.mxu0 %v1619_v22 }
 0x336   :  { %v564_v10 = vadd.f32 %v560_v7, %v551_v5  ;;  %v563_v11 = vadd.f32 %v556_v9, %v550_v8 }
 0x338   :  { %v566_v12 = vmax.f32 %v564_v10, 0.0  ;;  %v565_v13 = vmax.f32 %v563_v11, 0.0  ;;  %1434 = vmatpush3.bf16.msra.mxu0 %v1620_v23  ;;  %v839_v23 = vld [vmem:[#allocation10 + $0x11] ss:$8 sm:$0x3] }
 0x339   :  { %1435 = vmatprep.subr.bf16.mxu0 %v1621_v24 }
 0x33a   :  { %v568_v14 = vpack.c.bf16 %v566_v12, %v566_v12  ;;  %v567_v15 = vpack.c.bf16 %v565_v13, %v565_v13 }
 0x33c   :  { %793 = vmatprep.mubr.bf16.mxu1 %v568_v14  ;;  %1436 = vmatpush3.bf16.msra.mxu0 %v1622_v25 }
 0x33d   :  { %794 = vmatmul.mubr.bf16.vlgmr.msra.gmra.mxu1 %v567_v15  ;;  %1437 = vmatprep.subr.bf16.mxu0 %v1623_v26 }
 0x33e   :  { %1511 = vmatprep.mubr.msk.bf16.mxu1 %vm1796_vm1, %v1795_v0 }
 0x340   :  { %1438 = vmatpush3.bf16.msra.mxu0 %v1624_v27 }
 0x341   :  { %1439 = vmatprep.subr.bf16.mxu0 %v1625_v28 }
 0x344   :  { %1440 = vmatpush3.bf16.msra.mxu0 %v1626_v29 }
 0x345   :  { %1483 = vmatprep.subr.bf16.mxu0 %v1795_v0 }
 0x3fd   :  { %v795_v30 = vpop.f32.mrf.mxu1 }
 0x3fe   :  { %v802_v31 = vrot.slane %v795_v30, 4  ;;  %v814_v32 = vmul.f32 %v795_v30, %v795_v30 }
 0x3ff   :  { %v797_v33 = vpop.f32.mrf.mxu1 }
 0x400   :  { %v803_v34 = vadd.f32 %v802_v31, %v795_v30  ;;  %v816_v35 = vrot.slane %v814_v32, 4  ;;  %v808_v36 = vrot.slane %v797_v33, 4  ;;  %v815_v37 = vmul.f32 %v797_v33, %v797_v33 }
 0x401   :  { %v799_v38 = vpop.f32.mrf.mxu1 }
 0x402   :  { %v804_v39 = vrot.slane %v803_v34, 2  ;;  %v817_v40 = vadd.f32 %v816_v35, %v814_v32  ;;  %v809_v41 = vadd.f32 %v808_v36, %v797_v33  ;;  %v822_v42 = vrot.slane %v815_v37, 4  ;;  %v1632_v38 = vld [vmem:[%s2039_s6 + $0x10] sm:$0xff]  }
 0x403   :  { %v800_v43 = vpop.f32.mrf.mxu1 }
 0x404   :  { %v805_v44 = vadd.f32 %v804_v39, %v803_v34  ;;  %v818_v45 = vrot.slane %v817_v40, 2  ;;  %v810_v46 = vrot.slane %v809_v41, 2  ;;  %v823_v47 = vadd.f32 %v822_v42, %v815_v37  ;;  %v1633_v39 = vld [vmem:[%s2039_s6 + $0x8] sm:$0xff]  }
 0x406   :  { %v806_v48 = vrot.slane %v805_v44, 1  ;;  %v819_v50 = vadd.f32 %v818_v45, %v817_v40  ;;  %v811_v51 = vadd.f32 %v810_v46, %v809_v41  ;;  %v824_v52 = vrot.slane %v823_v47, 2  ;;  %v1634_v40 = vld [vmem:[%s2039_s6] sm:$0xff]  }
 0x408   :  { %v807_v53 = vadd.f32 %v806_v48, %v805_v44  ;;  %v820_v54 = vrot.slane %v819_v50, 1  ;;  %v812_v57 = vrot.slane %v811_v51, 1  ;;  %v825_v58 = vadd.f32 %v824_v52, %v823_v47 }
 0x40a   :  { %v821_v59 = vadd.f32 %v820_v54, %v819_v50  ;;  %v828_v60 = vmul.f32 0.125, %v807_v53  ;;  %v813_v61 = vadd.f32 %v812_v57, %v811_v51  ;;  %v826_v62 = vrot.slane %v825_v58, 1 }
 0x40c   :  { %v830_v63 = vmul.f32 0.125, %v821_v59  ;;  %v832_v1 = vmul.f32 %v828_v60, %v828_v60  ;;  %v827_v2 = vadd.f32 %v826_v62, %v825_v58  ;;  %v829_v4 = vmul.f32 0.125, %v813_v61 }
 0x40e   :  { %v834_v5 = vsub.f32 %v830_v63, %v832_v1  ;;  %v831_v7 = vmul.f32 0.125, %v827_v2  ;;  %v833_v8 = vmul.f32 %v829_v4, %v829_v4 }
 0x410   :  { %v840_v9 = vadd.f32 1e-05, %v834_v5  ;;  %v835_v10 = vsub.f32 %v831_v7, %v833_v8  ;;  %v1099_v5 = vld [vmem:[#allocation10 + $0x4] ss:$0 sm:$0xff] }
 0x412   :  { %v841_v11 = vadd.f32 1e-05, %v835_v10  ;;  %1647 = vrsqrt.f32 %v840_v9  ;;  %v1100_v9 = vld [vmem:[#allocation10 + $0x12] ss:$0 sm:$0xff] }
 0x414   :  { %1649 = vrsqrt.f32 %v841_v11 }
 0x41f   :  { %v1648_v12 = vpop.eup %1647 }
 0x421   :  { %v1650_v13 = vpop.eup %1649 }
 0x422   :  { %v846_v14 = vcombine.low %v1648_v12, %v1650_v13 }
 0x424   :  { %v853_v15 = vrot.slane %v846_v14, %v1952_v49 }
 0x426   :  { %v860_v17 = vrot.slane %v853_v15, %v1952_v49 }
 0x428   :  { %v862_v6 = vmul.f32 %v860_v17, %v837_v16  ;;  %v1635_v16 = vld [vmem:[%s2040_s7 + $0x18] sm:$0xff]   ;;  %v1636_v17 = vld [vmem:[%s2040_s7 + $0x10] sm:$0xff]  }
 0x429   :  { %1504 = vmatpush3.bf16.msra.mxu1 %v1635_v16 }
 0x42a   :  { %v867_v18 = vrot.slane %v862_v6, %v1956_v55  ;;  %v871_v3 = vrot.slane %v862_v6, %v1958_v56  ;;  %1505 = vmatprep.subr.bf16.mxu1 %v1795_v0  ;;  %v1637_v6 = vld [vmem:[%s2040_s7 + $0x8] sm:$0xff]  }
 0x42c   :  { %v874_v19 = vmul.f32 %v867_v18, %v828_v60  ;;  %v875_v20 = vmul.f32 %v871_v3, %v829_v4  ;;  %v896_v26 = vmul.f32 %v871_v3, %v797_v33  ;;  %v895_v28 = vmul.f32 %v867_v18, %v795_v30  ;;  %v1630_v30 = vld [vmem:[%s2039_s6 + $0x20] sm:$0xff]   ;;  %v1631_v33 = vld [vmem:[%s2039_s6 + $0x18] sm:$0xff]  }
 0x42d   :  { %1506 = vmatpush3.bf16.msra.mxu1 %v1636_v17  ;;  %v1638_v18 = vld [vmem:[%s2040_s7] sm:$0xff]  }
 0x42e   :  { %v878_v21 = vcombine.low %v874_v19, %v875_v20  ;;  %1507 = vmatprep.subr.bf16.mxu1 %v1795_v0 }
 0x430   :  { %v885_v22 = vrot.slane %v878_v21, %v1952_v49 }
 0x431   :  { %1508 = vmatpush3.bf16.msra.mxu1 %v1637_v6 }
 0x432   :  { %v892_v24 = vrot.slane %v885_v22, %v1952_v49  ;;  %v1627_v49 = vld [vmem:[%s2039_s6 + $0x38] sm:$0xff]   ;;  %1509 = vmatprep.subr.bf16.mxu1 %v1795_v0 }
 0x434   :  { %v894_v25 = vsub.f32 %v839_v23, %v892_v24 }
 0x435   :  { %1510 = vmatpush3.bf16.msra.mxu1 %v1638_v18 }
 0x436   :  { %v905_v27 = vrot.slane %v894_v25, %v1958_v56  ;;  %v901_v29 = vrot.slane %v894_v25, %v1956_v55  ;;  %v1628_v55 = vld [vmem:[%s2039_s6 + $0x30] sm:$0xff]   ;;  %v1629_v56 = vld [vmem:[%s2039_s6 + $0x28] sm:$0xff]  }
 0x438   :  { %v909_v31 = vadd.f32 %v905_v27, %v896_v26  ;;  %v908_v32 = vadd.f32 %v901_v29, %v895_v28 }
 0x43a   :  { %v911_v34 = vmax.f32 %v909_v31, 0.0  ;;  %v910_v35 = vmax.f32 %v908_v32, 0.0 }
 0x43c   :  { %v913_v36 = vpack.c.bf16 %v911_v34, %v911_v34  ;;  %v912_v37 = vpack.c.bf16 %v910_v35, %v910_v35 }
 0x43e   :  { %1074 = vmatprep.mubr.bf16.mxu0 %v913_v36 }
 0x43f   :  { %1075 = vmatmul.mubr.bf16.vlgmr.msra.gmra.mxu0 %v912_v37 }
 0x440   :  { %1499 = vmatprep.mubr.msk.bf16.mxu0 %vm1796_vm1, %v1795_v0  ;;  %1484 = vmatpush3.bf16.msra.mxu0 %v1627_v49 }
 0x441   :  { %1485 = vmatprep.subr.bf16.mxu0 %v1795_v0 }
 0x444   :  { %1486 = vmatpush3.bf16.msra.mxu0 %v1628_v55 }
 0x445   :  { %1487 = vmatprep.subr.bf16.mxu0 %v1795_v0 }
 0x448   :  { %1488 = vmatpush3.bf16.msra.mxu0 %v1629_v56 }
 0x449   :  { %1489 = vmatprep.subr.bf16.mxu0 %v1795_v0 }
 0x44c   :  { %1490 = vmatpush3.bf16.msra.mxu0 %v1630_v30 }
 0x44d   :  { %1491 = vmatprep.subr.bf16.mxu0 %v1795_v0 }
 0x450   :  { %1492 = vmatpush3.bf16.msra.mxu0 %v1631_v33 }
 0x451   :  { %1493 = vmatprep.subr.bf16.mxu0 %v1795_v0 }
 0x454   :  { %1494 = vmatpush3.bf16.msra.mxu0 %v1632_v38  ;;  %v1233_v38 = vld [vmem:[#allocation10 + $0x5] ss:$0 sm:$0xff] }
 0x455   :  { %1495 = vmatprep.subr.bf16.mxu0 %v1795_v0 }
 0x458   :  { %1496 = vmatpush3.bf16.msra.mxu0 %v1633_v39 }
 0x459   :  { %1497 = vmatprep.subr.bf16.mxu0 %v1795_v0 }
 0x45c   :  { %1498 = vmatpush3.bf16.msra.mxu0 %v1634_v40 }
 0x4ff   :  { %v1441_v41 = vpop.f32.mrf.mxu0 }
 0x501   :  { %v1442_v42 = vpop.f32.mrf.mxu0 }
 0x502   :  { %v1443_v43 = vadd.f32 %v1442_v42, %v1441_v41  ;;  %v1234_v41 = vld [vmem:[#allocation10 + $0x13] ss:$0 sm:$0xff] }
 0x503   :  { %v1444_v44 = vpop.f32.mrf.mxu0 }
 0x504   :  { %v1082_v45 = vrot.slane %v1443_v43, 4  ;;  %v1088_v46 = vmul.f32 %v1443_v43, %v1443_v43 }
 0x505   :  { %v1445_v47 = vpop.f32.mrf.mxu0 }
 0x506   :  { %v1083_v48 = vadd.f32 %v1443_v43, %v1082_v45  ;;  %v1089_v50 = vrot.slane %v1088_v46, 4 }
 0x508   :  { %v1084_v51 = vrot.slane %v1083_v48, 2  ;;  %v1090_v52 = vadd.f32 %v1089_v50, %v1088_v46 }
 0x50a   :  { %v1085_v53 = vadd.f32 %v1084_v51, %v1083_v48  ;;  %v1091_v54 = vrot.slane %v1090_v52, 2  ;;  %v1243_v48 = vld [vmem:[#allocation10 + $0x14] ss:$0 sm:$0xff] }
 0x50c   :  { %v1086_v57 = vrot.slane %v1085_v53, 1  ;;  %v1092_v58 = vadd.f32 %v1091_v54, %v1090_v52 }
 0x50e   :  { %v1087_v59 = vadd.f32 %v1086_v57, %v1085_v53  ;;  %v1093_v60 = vrot.slane %v1092_v58, 1 }
 0x510   :  { %v1094_v61 = vadd.f32 %v1093_v60, %v1092_v58  ;;  %v1095_v62 = vmul.f32 0.125, %v1087_v59 }
 0x512   :  { %v1096_v63 = vmul.f32 0.125, %v1094_v61  ;;  %v1097_v1 = vmul.f32 %v1095_v62, %v1095_v62 }
 0x514   :  { %v1098_v2 = vsub.f32 %v1096_v63, %v1097_v1 }
 0x516   :  { %v1101_v4 = vadd.f32 1e-05, %v1098_v2 }
 0x518   :  { %1651 = vrsqrt.f32 %v1101_v4 }
 0x525   :  { %v1652_v7 = vpop.eup %1651 }
 0x526   :  { %v1103_v8 = vmul.f32 %v1652_v7, %v1099_v5 }
 0x528   :  { %v1104_v10 = vmul.f32 %v1103_v8, %v1095_v62  ;;  %v1106_v11 = vmul.f32 %v1443_v43, %v1103_v8 }
 0x52a   :  { %v1105_v12 = vsub.f32 %v1100_v9, %v1104_v10 }
 0x52c   :  { %v1107_v13 = vadd.f32 %v1106_v11, %v1105_v12 }
 0x52e   :  { %v1108_v14 = vmax.f32 %v1107_v13, 0.0 }
 0x530   :  { %v1109_v15 = vpack.c.bf16 %v1108_v14, %v1108_v14 }
 0x532   :  { %1500 = vmatmul.mubr.bf16.vlgmr.msra.gmra.mxu0 %v1109_v15 }
 0x5f2   :  { %v1208_v3 = vpop.f32.mrf.mxu0 }
 0x5f3   :  { %v1214_v19 = vsel %vm186_vm4, %v1208_v3, 0.0  ;;  %v1221_v20 = vmul.f32 %v1208_v3, %v1208_v3 }
 0x5f4   :  { %v1215_v21 = vrot.slane %v1214_v19, 4  ;;  %v1501_v22 = vpop.f32.mrf.mxu0 }
 0x5f5   :  { %v1222_v23 = vsel %vm186_vm4, %v1221_v20, 0.0 }
 0x5f6   :  { %v1216_v24 = vadd.f32 %v1215_v21, %v1214_v19  ;;  %v1223_v25 = vrot.slane %v1222_v23, 4  ;;  %v1211_v26 = vpop.f32.mrf.mxu0 }
 0x5f8   :  { %v1217_v27 = vrot.slane %v1216_v24, 2  ;;  %v1224_v28 = vadd.f32 %v1223_v25, %v1222_v23  ;;  %v1502_v29 = vpop.f32.mrf.mxu0 }
 0x5fa   :  { %v1218_v0 = vadd.f32 %v1217_v27, %v1216_v24  ;;  %v1225_v31 = vrot.slane %v1224_v28, 2 }
 0x5fc   :  { %v1219_v32 = vrot.slane %v1218_v0, 1  ;;  %v1226_v34 = vadd.f32 %v1225_v31, %v1224_v28 }
 0x5fe   :  { %v1220_v35 = vadd.f32 %v1219_v32, %v1218_v0  ;;  %v1227_v36 = vrot.slane %v1226_v34, 1 }
 0x600   :  { %v1228_v37 = vadd.f32 %v1227_v36, %v1226_v34  ;;  %v1229_v49 = vmul.f32 0.125, %v1220_v35 }
 0x602   :  { %v1230_v55 = vmul.f32 0.125, %v1228_v37  ;;  %v1231_v56 = vmul.f32 %v1229_v49, %v1229_v49 }
 0x604   :  { %v1232_v30 = vsub.f32 %v1230_v55, %v1231_v56 }
 0x606   :  { %v1235_v33 = vadd.f32 1e-05, %v1232_v30 }
 0x608   :  { %1653 = vrsqrt.f32 %v1235_v33 }
 0x615   :  { %v1654_v39 = vpop.eup %1653 }
 0x616   :  { %v1237_v40 = vmul.f32 %v1654_v39, %v1233_v38 }
 0x618   :  { %v1238_v42 = vmul.f32 %v1237_v40, %v1229_v49  ;;  %v1240_v44 = vmul.f32 %v1237_v40, %v1208_v3 }
 0x61a   :  { %v1239_v43 = vsub.f32 %v1234_v41, %v1238_v42 }
 0x61c   :  { %v1241_v45 = vadd.f32 %v1240_v44, %v1239_v43 }
 0x61e   :  { %v1242_v46 = vmax.f32 %v1241_v45, 0.0 }
 0x620   :  { %v1244_v47 = vpack.c.bf16 %v1242_v46, %v1242_v46 }
 0x622   :  { %1512 = vmatmul.mubr.msk.bf16.vlgmr.msra.gmra.mxu1 %vm186_vm4, %v1244_v47 }
 0x6e2   :  { %v1314_v50 = vpop.f32.mrf.mxu1 }
 0x6e3   :  { %v1315_v51 = vadd.f32 %v1314_v50, %v1243_v48 }
 0x6e4   :  { %v1513_v52 = vpop.f32.mrf.mxu1 }
 0x6e5   :  { %1321 = vst.msk [vmem:[%s2042_s9] sm:$0xff] %vm1320_vm5, %v1315_v51 }
 0x6e6   :  { %v1317_v53 = vpop.f32.mrf.mxu1 }
 0x6e8   :  { %v1514_v54 = vpop.f32.mrf.mxu1 }
 0x6e9   :  { %1326 = vsyncpa [#allocation3], 1 }
 0x6ea   :  { %1327 = vsyncpa [#allocation5], 1 }
 0x6eb   :  { %1328 = vsyncpa [#allocation8], 1 }
 0x6ec   :  { %1329 = vsyncpa [#allocation11], 1 }

</bundles_post_ra>
